<compile_context>
chip_gen: v7x
topology: tpu7x:2x2x1
jax: 0.10.0
libtpu: 0.0.40
codegen_flags: <defaults>
</compile_context>

<pallas_src>
import functools

import numpy as np

import jax
import jax.numpy as jnp
from jax import lax
from jax.experimental import pallas as pl
from jax.experimental.pallas import tpu as pltpu


# ---------------------------------------------------------------------------
# Kernel
# ---------------------------------------------------------------------------

def _focal_weight(pt, gamma):
    """(1 - pt) ** gamma with an integer-gamma VPU fast path (no EUP pow)."""
    g = float(gamma)
    if g == 0.0:
        return jnp.ones_like(pt)                    # (1 - pt) ** 0 == 1
    if g.is_integer() and 1.0 <= g <= 8.0:
        one_m = 1.0 - pt
        w = one_m
        for _ in range(int(g) - 1):
            w = w * one_m
        return w
    return (1.0 - pt) ** g


def _ifocal_kernel(*refs, gamma, c, n_total, needs_mask, lane_dense,
                   has_alpha_ref, alpha_scalar):
    if has_alpha_ref:
        x_ref, t_ref, a_ref, out_ref = refs
    else:
        x_ref, t_ref, out_ref = refs
        a_ref = None

    x = x_ref[...].astype(jnp.float32)      # lane_dense: (C, T) else (T, C)
    t = t_ref[...]                          # lane_dense: (1, T) else (T, 1)

    class_axis = 0 if lane_dense else 1
    sample_axis = 1 - class_axis
    tile_n = x.shape[sample_axis]

    # --- one-hot of the target class (broadcast compare, no gather) ---
    cls = lax.broadcasted_iota(jnp.int32, x.shape, class_axis)
    onehot = cls == t                       # same shape as x

    # --- numerically stable softmax pieces (max of z is exactly 0) ---
    m = jnp.max(x, axis=class_axis, keepdims=True)
    z = x - m
    sumexp = jnp.sum(jnp.exp(z), axis=class_axis, keepdims=True)

    # log p_t at the target class; never materialize the full log-softmax.
    zt = jnp.sum(jnp.where(onehot, z, 0.0), axis=class_axis, keepdims=True)
    logpt = zt - jnp.log(sumexp)            # per-sample
    pt = jnp.exp(logpt)

    focal_w = _focal_weight(pt, gamma)
    loss = -1.0 * focal_w * logpt

    # --- alpha weighting ---
    if a_ref is not None:
        alpha_b = jnp.broadcast_to(a_ref[...].astype(jnp.float32), x.shape)
        at = jnp.sum(jnp.where(onehot, alpha_b, 0.0), axis=class_axis,
                     keepdims=True)
        loss = loss * at
    elif alpha_scalar is not None and float(alpha_scalar) != 1.0:
        loss = loss * jnp.float32(alpha_scalar)
    # uniform all-ones alpha: nothing to do.

    # --- mislabeled-sample screening ---
    #   max softmax prob == exp(0)/sumexp == 1/sumexp
    #   "argmax != target"  <=>  target logit < row max  <=>  zt < 0
    #   (differs from first-occurrence argmax only on exact logit ties)
    ptop = 1.0 / sumexp
    screened = (ptop > c) & (zt < 0.0)
    loss = jnp.where(screened, jnp.float32(1e-5), loss)

    # --- mask padded samples in the final (partial) tile only ---
    if needs_mask:
        idx_shape = (1, tile_n) if lane_dense else (tile_n, 1)
        samp = (pl.program_id(0) * tile_n
                + lax.broadcasted_iota(jnp.int32, idx_shape, sample_axis))
        loss = jnp.where(samp < n_total, loss, 0.0)

    partial = jnp.sum(loss)
    # Lane-dense (8,128) store of this tile's partial sum.
    out_ref[...] = jnp.broadcast_to(partial, out_ref.shape).astype(jnp.float32)


# ---------------------------------------------------------------------------
# Host-side sizing helpers
# ---------------------------------------------------------------------------

def _round_up(x, m):
    return ((x + m - 1) // m) * m


def _vmem_limit_bytes():
    """Generation-aware scoped-VMEM limit (v7x: 64 MiB physical per TC)."""
    cap = 128 * 1024 * 1024
    try:
        cap = int(getattr(pltpu.get_tpu_info(), "vmem_capacity_bytes", cap))
    except Exception:
        pass
    if cap <= 64 * 1024 * 1024:           # v7x-class
        return 40 * 1024 * 1024
    return 64 * 1024 * 1024               # v5e / v6e (128 MiB physical)


def _pick_tile_lane_dense(n, cnum, itemsize, budget_bytes):
    """Samples-per-tile for the (C, tile_n) lane-dense layout (C < 128)."""
    c_sub = _round_up(cnum, 8)            # sublane padding of the class axis
    # Per-sample-column VMEM bytes: 2 double-buffered logit tiles, 2 padded
    # int32 target tiles, ~4 full-tile f32 intermediates.
    per_col = 2 * c_sub * itemsize + 2 * 8 * 4 + 4 * c_sub * 4
    t = budget_bytes // max(1, per_col)
    t = min(t, 32768)
    t = max(128, (t // 128) * 128)        # lane granularity
    return n if t >= n else t


def _pick_tile_row_major(n, cnum, itemsize, budget_bytes):
    """Rows-per-tile for the (tile_n, C) layout (C >= 128)."""
    c_lane = _round_up(cnum, 128)         # lane padding of the class axis
    # Per-row VMEM bytes: 2 double-buffered logit tiles, 2 lane-padded int32
    # target tiles, ~5 full-tile f32/i32 intermediates.
    per_row = 2 * c_lane * itemsize + 2 * 128 * 4 + 5 * c_lane * 4
    t = budget_bytes // max(1, per_row)
    t = min(t, 32768)
    t = max(8, (t // 8) * 8)              # sublane granularity
    return n if t >= n else t


def _static_uniform_alpha(alpha):
    """(is_uniform, value) when alpha is statically a constant vector."""
    if alpha is None:
        return True, 1.0
    try:
        a = np.asarray(alpha, dtype=np.float32)
    except Exception:
        return False, None                # traced / unknown at build time
    if a.size == 0:
        return True, 1.0
    v = a.reshape(-1)[0]
    if np.all(a == v):
        return True, float(v)
    return False, None


# ---------------------------------------------------------------------------
# Public wrapper
# ---------------------------------------------------------------------------

def i_focal_loss(inputs, target, alpha=None, gamma=0.0, c=0.5,
                 size_average=True):
    """inputs: (N, C) logits (f32 or bf16); target: (N,) int labels."""
    n, cnum = inputs.shape
    itemsize = jnp.dtype(inputs.dtype).itemsize

    vmem_limit = _vmem_limit_bytes()
    budget = min(vmem_limit // 3, 12 * 1024 * 1024)

    uniform, alpha_val = _static_uniform_alpha(alpha)
    lane_dense = cnum < 128

    if lane_dense:
        # Lane-dense layout: samples along the 128-wide lane axis.
        x_in = inputs.T                                       # (C, N)
        t_in = target.reshape(1, n).astype(jnp.int32)         # (1, N)
        tile_n = _pick_tile_lane_dense(n, cnum, itemsize, budget)
        x_spec = pl.BlockSpec((cnum, tile_n), lambda i: (0, i))
        t_spec = pl.BlockSpec((1, tile_n), lambda i: (0, i))
        a_in = (None if uniform
                else jnp.asarray(alpha, jnp.float32).reshape(cnum, 1))
        a_spec = (None if uniform
                  else pl.BlockSpec((cnum, 1), lambda i: (0, 0)))
    else:
        x_in = inputs                                         # (N, C)
        t_in = target.reshape(n, 1).astype(jnp.int32)         # (N, 1)
        tile_n = _pick_tile_row_major(n, cnum, itemsize, budget)
        x_spec = pl.BlockSpec((tile_n, cnum), lambda i: (i, 0))
        t_spec = pl.BlockSpec((tile_n, 1), lambda i: (i, 0))
        a_in = (None if uniform
                else jnp.asarray(alpha, jnp.float32).reshape(1, cnum))
        a_spec = (None if uniform
                  else pl.BlockSpec((1, cnum), lambda i: (0, 0)))

    nt = pl.cdiv(n, tile_n)
    needs_mask = (n % tile_n) != 0

    kernel = functools.partial(
        _ifocal_kernel,
        gamma=float(gamma),
        c=float(c),
        n_total=n,
        needs_mask=needs_mask,
        lane_dense=lane_dense,
        has_alpha_ref=(a_in is not None),
        alpha_scalar=(alpha_val if uniform else None),
    )

    in_specs = [x_spec, t_spec] + ([a_spec] if a_in is not None else [])
    operands = [x_in, t_in] + ([a_in] if a_in is not None else [])

    partials = pl.pallas_call(
        kernel,
        out_shape=jax.ShapeDtypeStruct((nt, 8, 128), jnp.float32),
        grid=(nt,),
        in_specs=in_specs,
        out_specs=pl.BlockSpec((1, 8, 128), lambda i: (i, 0, 0)),
        compiler_params=pltpu.CompilerParams(
            dimension_semantics=("parallel",),
            vmem_limit_bytes=vmem_limit,
        ),
    )(*operands)

    total = jnp.sum(partials[:, 0, 0])
    if size_average:
        total = total / jnp.float32(n)     # .mean() over the global batch
    return total


# ---------------------------------------------------------------------------
# Pure-JAX reference (mirrors the PyTorch forward) and a quick self-check
# ---------------------------------------------------------------------------

def _reference(inputs, target, alpha, gamma, c, size_average):
    x = inputs.astype(jnp.float32)
    logp = jax.nn.log_softmax(x, axis=-1)
    logpt = jnp.take_along_axis(logp, target[:, None], axis=-1)[:, 0]
    pt = jnp.exp(logpt)
    at = alpha[target]
    loss = -1.0 * (1.0 - pt) ** gamma * logpt * at
    probs = jax.nn.softmax(x, axis=-1)
    ptop = jnp.max(probs, axis=-1)
    plab = jnp.argmax(probs, axis=-1)
    loss = jnp.where((ptop > c) & (plab != target), jnp.float32(1e-5), loss)
    return loss.mean() if size_average else loss.sum()


if __name__ == "__main__":
    key = jax.random.PRNGKey(0)
    k1, k2, k3, k4, k5 = jax.random.split(key, 5)

    # Case 1: small C (lane-dense path), default all-ones alpha, mean.
    N1, C1 = 8, 4
    x1 = jax.random.normal(k1, (N1, C1), dtype=jnp.float32) * 2.0
    t1 = jax.random.randint(k2, (N1,), 0, C1, dtype=jnp.int32)
    out1 = jax.block_until_ready(
        i_focal_loss(x1, t1, alpha=None, gamma=2.0, c=0.5, size_average=True))
    ref1 = jax.block_until_ready(
        _reference(x1, t1, jnp.ones((C1,), jnp.float32), 2.0, 0.5, True))
    assert abs(float(out1) - float(ref1)) <= 1e-5 + 1e-4 * abs(float(ref1)), \
        (float(out1), float(ref1))

    # Case 2: large C (row-major path), non-uniform alpha, sum.
    N2, C2 = 16, 256
    x2 = jax.random.normal(k3, (N2, C2), dtype=jnp.float32)
    t2 = jax.random.randint(k4, (N2,), 0, C2, dtype=jnp.int32)
    a2 = jax.random.uniform(k5, (C2,), jnp.float32, 0.5, 1.5)
    out2 = jax.block_until_ready(
        i_focal_loss(x2, t2, alpha=a2, gamma=2.0, c=0.5, size_average=False))
    ref2 = jax.block_until_ready(_reference(x2, t2, a2, 2.0, 0.5, False))
    assert abs(float(out2) - float(ref2)) <= 1e-5 + 1e-4 * abs(float(ref2)), \
        (float(out2), float(ref2))

    print("KERNEL_OK")
</pallas_src>

<mosaic_0001>
module attributes {stable_mosaic.version = 11 : i64} {
  func.func @_ifocal_kernel(%arg0: i32, %arg1: memref<4x8xf32, #tpu.memory_space<vmem>>, %arg2: memref<1x8xi32, #tpu.memory_space<vmem>>, %arg3: memref<1x8x128xf32, #tpu.memory_space<vmem>>) attributes {dimension_semantics = [#tpu.dimension_semantics<parallel>], iteration_bounds = array<i64: 1>, scalar_prefetch = 0 : i64, scratch_operands = 0 : i64, tpu.core_type = #tpu.core_type<tc>, window_params = [{transform_indices = @transform_0, window_bounds = array<i64: 4, 8>}, {transform_indices = @transform_1, window_bounds = array<i64: 1, 8>}, {transform_indices = @transform_2, window_bounds = array<i64: 1, 8, 128>}]} {
    %c0 = arith.constant 0 : index
    %c0_0 = arith.constant 0 : index
    %0 = vector.load %arg1[%c0, %c0_0] : memref<4x8xf32, #tpu.memory_space<vmem>>, vector<4x8xf32>
    %c0_1 = arith.constant 0 : index
    %c0_2 = arith.constant 0 : index
    %1 = vector.load %arg2[%c0_1, %c0_2] : memref<1x8xi32, #tpu.memory_space<vmem>>, vector<1x8xi32>
    %2 = tpu.iota {dimensions = array<i32: 0>} : vector<4x8xi32>
    %3 = vector.broadcast %1 : vector<1x8xi32> to vector<4x8xi32>
    %4 = arith.cmpi eq, %2, %3 : vector<4x8xi32>
    %cst = arith.constant dense<0xFF800000> : vector<8xf32>
    %5 = vector.multi_reduction <maximumf>, %0, %cst [0] : vector<4x8xf32> to vector<8xf32>
    %6 = vector.shape_cast %5 : vector<8xf32> to vector<1x8xf32>
    %7 = vector.broadcast %6 : vector<1x8xf32> to vector<4x8xf32>
    %8 = arith.subf %0, %7 : vector<4x8xf32>
    %9 = math.exp %8 : vector<4x8xf32>
    %cst_3 = arith.constant dense<0.000000e+00> : vector<8xf32>
    %10 = vector.multi_reduction <add>, %9, %cst_3 [0] : vector<4x8xf32> to vector<8xf32>
    %11 = vector.shape_cast %10 : vector<8xf32> to vector<1x8xf32>
    %cst_4 = arith.constant 0.000000e+00 : f32
    %12 = vector.broadcast %cst_4 : f32 to vector<4x8xf32>
    %13 = arith.select %4, %8, %12 : vector<4x8xi1>, vector<4x8xf32>
    %cst_5 = arith.constant dense<0.000000e+00> : vector<8xf32>
    %14 = vector.multi_reduction <add>, %13, %cst_5 [0] : vector<4x8xf32> to vector<8xf32>
    %15 = vector.shape_cast %14 : vector<8xf32> to vector<1x8xf32>
    %16 = math.log %11 : vector<1x8xf32>
    %17 = arith.subf %15, %16 : vector<1x8xf32>
    %18 = math.exp %17 : vector<1x8xf32>
    %cst_6 = arith.constant 1.000000e+00 : f32
    %19 = vector.broadcast %cst_6 : f32 to vector<1x8xf32>
    %20 = arith.subf %19, %18 : vector<1x8xf32>
    %21 = arith.mulf %20, %20 : vector<1x8xf32>
    %cst_7 = arith.constant -1.000000e+00 : f32
    %22 = vector.broadcast %cst_7 : f32 to vector<1x8xf32>
    %23 = arith.mulf %22, %21 : vector<1x8xf32>
    %24 = arith.mulf %23, %17 : vector<1x8xf32>
    %cst_8 = arith.constant 1.000000e+00 : f32
    %25 = vector.broadcast %cst_8 : f32 to vector<1x8xf32>
    %26 = arith.divf %25, %11 : vector<1x8xf32>
    %cst_9 = arith.constant 5.000000e-01 : f32
    %27 = vector.broadcast %cst_9 : f32 to vector<1x8xf32>
    %28 = arith.cmpf ogt, %26, %27 : vector<1x8xf32>
    %cst_10 = arith.constant 0.000000e+00 : f32
    %29 = vector.broadcast %cst_10 : f32 to vector<1x8xf32>
    %30 = arith.cmpf olt, %15, %29 : vector<1x8xf32>
    %31 = arith.andi %28, %30 : vector<1x8xi1>
    %cst_11 = arith.constant 9.99999974E-6 : f32
    %32 = vector.broadcast %cst_11 : f32 to vector<1x8xf32>
    %33 = arith.select %31, %32, %24 : vector<1x8xi1>, vector<1x8xf32>
    %34 = vector.shape_cast %33 : vector<1x8xf32> to vector<1x1x8xf32>
    %cst_12 = arith.constant dense<0.000000e+00> : vector<1xf32>
    %35 = vector.multi_reduction <add>, %34, %cst_12 [1, 2] : vector<1x1x8xf32> to vector<1xf32>
    %36 = vector.shape_cast %35 : vector<1xf32> to vector<1x1x1xf32>
    %37 = vector.extract %36[0, 0, 0] : f32 from vector<1x1x1xf32>
    %38 = vector.broadcast %37 : f32 to vector<1x8x128xf32>
    %c0_13 = arith.constant 0 : index
    %c0_14 = arith.constant 0 : index
    %c0_15 = arith.constant 0 : index
    %39 = vector.load %arg3[%c0_13, %c0_14, %c0_15] : memref<1x8x128xf32, #tpu.memory_space<vmem>>, vector<1x8x128xf32>
    tpu.vector_store %arg3[%c0_13, %c0_14, %c0_15], %38 {strides = array<i32>} : memref<1x8x128xf32, #tpu.memory_space<vmem>>, vector<1x8x128xf32>,
    return
  }
  func.func @transform_0(%arg0: i32) -> (i32, i32) {
    %c0_i32 = arith.constant 0 : i32
    %c0_i32_0 = arith.constant 0 : i32
    return %c0_i32, %arg0 : i32, i32
  }
  func.func @transform_1(%arg0: i32) -> (i32, i32) {
    %c0_i32 = arith.constant 0 : i32
    %c0_i32_0 = arith.constant 0 : i32
    return %c0_i32, %arg0 : i32, i32
  }
  func.func @transform_2(%arg0: i32) -> (i32, i32, i32) {
    %c0_i32 = arith.constant 0 : i32
    %c0_i32_0 = arith.constant 0 : i32
    %c0_i32_1 = arith.constant 0 : i32
    return %arg0, %c0_i32, %c0_i32_0 : i32, i32, i32
  }
}

</mosaic_0001>

<bundles_post_ra>
// kernel: tpu_custom_call.1
= control target key start
LH: loop header
LB: loop body
LE: loop exit
PB: predicated region body
PF: predicated region fallthrough
CT: control target
= control target key end

     0   :  { %7 = vsyncpa [#allocation3], 0  ;;  %s258_s0 = inlined_call_operand.hbm [shape: f32[4,8], index: 0, kind: input, shape index: {}]   ;;  %s259_s1 = inlined_call_operand.hbm [shape: s32[1,8], index: 1, kind: input, shape index: {}]   ;;  %s260_s2 = inlined_call_operand.hbm [shape: f32[1,8,128], index: 2, kind: output, shape index: {}]  }
   0x1   :  { %8 = vsyncpa [#allocation6], 0 }
   0x2   :  { %9 = vsyncpa [#allocation4], 0  ;;  %s201_s9 = smov [#allocation2]   ;;  %s202_s11 = smov [#allocation5]  }
   0x3   :  { %s16_s10 = sshll.u32 %s201_s9, 4  ;;  %s26_s12 = sshll.u32 %s202_s11, 4  ;;  %s17_s10 = int_to_ptr.vmem [resolvable:$true] %s16_s10  ;;  %s27_s12 = int_to_ptr.vmem [resolvable:$true] %s26_s12 }
   0x4   :  { %s129_s15 = scalar_lea.hbm %s258_s0, 64 }
   0x5   :  { %p130_p0 = scmp.ne.s32.totalorder %s258_s0, %s129_s15  ;;  %p133_p1 = scmp.lt.u32.totalorder %s129_s15, %s258_s0 }
   0x7   :  { %p135_p2 = pnand %p133_p1, %p130_p0 }
   0x9   :  { %138 = shalt.err (!%p135_p2)
}
   0xa   :  { %s139_s20 = scalar_lea.vmem %s17_s10, 64  ;;  %p144_p4 = scmp.lt.s32.totalorder %s17_s10, %s17_s10 }
   0xb   :  { %p140_p3 = scmp.ne.s32.totalorder %s17_s10, %s139_s20  ;;  %p145_p5 = scmp.lt.s32.totalorder %s139_s20, %s139_s20 }
   0xd   :  { %p146_p6 = por %p145_p5, %p144_p4 }
   0xf   :  { %p147_p7 = pnand %p146_p6, %p140_p3 }
  0x11   :  { %150 = shalt.err (!%p147_p7)
}
  0x12   :  { %19 = dma.hbm_to_vmem [thread:$0]  %s258_s0, 64, %s17_s10, [#allocation3]  }
  0x13   :  { %s151_s25 = scalar_lea.hbm %s259_s1, 16 }
  0x14   :  { %p152_p8 = scmp.ne.s32.totalorder %s259_s1, %s151_s25  ;;  %p155_p9 = scmp.lt.u32.totalorder %s151_s25, %s259_s1 }
  0x16   :  { %p157_p10 = pnand %p155_p9, %p152_p8 }
  0x18   :  { %160 = shalt.err (!%p157_p10)
}
  0x19   :  { %s161_s30 = scalar_lea.vmem %s27_s12, 16  ;;  %s165_s3 = scalar_lea.vmem %s27_s12, 32 }
  0x1a   :  { %p162_p11 = scmp.ne.s32.totalorder %s27_s12, %s161_s30  ;;  %p166_p12 = scmp.lt.s32.totalorder %s27_s12, %s27_s12 }
  0x1b   :  { %p167_p13 = scmp.lt.s32.totalorder %s165_s3, %s161_s30 }
  0x1d   :  { %p168_p0 = por %p167_p13, %p166_p12 }
  0x1f   :  { %p169_p1 = pnand %p168_p0, %p162_p11 }
  0x21   :  { %172 = shalt.err (!%p169_p1)
}
  0x22   :  { %29 = dma.hbm_to_vmem [thread:$0]  %s259_s1, 16, %s27_s12, [#allocation6]  }
  0x23   :  { %195 = dma.done.wait [#allocation3], 64  }
  0x24   :  { %196 = vsyncadd [#allocation3], 4294967232 }
  0x25   :  { %197 = dma.done.wait [#allocation6], 16  }
  0x26   :  { %198 = vsyncadd [#allocation6], 4294967280  ;;  %vm45_vm0 = vcmask 60416   ;;  %v36_v0 = vld [vmem:[#allocation2] sm:$0xf]  ;;  %v38_v8 = vlaneseq  ;;  %vm86_vm5 = vcmask 57344  }
  0x27   :  { %v46_v1 = vsel %vm45_vm0, %v36_v0, -inf  ;;  %v115_v12 = vld [vmem:[#allocation5] ss:$0 sm:$0xff]  ;;  %s203_s1 = smov [#allocation7]  }
  0x28   :  { %v47_v2 = vrot.slane %v46_v1, 4  ;;  %v39_v11 = vshrl.u32 %v38_v8, 7  ;;  %s105_s5 = sshll.u32 %s203_s1, 4  ;;  %s106_s5 = int_to_ptr.vmem [resolvable:$true] %s105_s5 }
  0x29   :  { %s173_s7 = scalar_lea.vmem %s106_s5, 128  ;;  %p178_p3 = scmp.lt.s32.totalorder %s106_s5, %s106_s5 }
  0x2a   :  { %v48_v3 = vmax.f32 %v46_v1, %v47_v2  ;;  %vm44_vm1 = vcmp.eq.s32.totalorder %v39_v11, %v115_v12  ;;  %p174_p2 = scmp.ne.s32.totalorder %s106_s5, %s173_s7  ;;  %p179_p4 = scmp.lt.s32.totalorder %s173_s7, %s173_s7 }
  0x2c   :  { %v49_v4 = vrot.slane %v48_v3, 2  ;;  %p180_p5 = por %p179_p4, %p178_p3 }
  0x2e   :  { %v50_v5 = vmax.f32 %v48_v3, %v49_v4  ;;  %p181_p6 = pnand %p180_p5, %p174_p2 }
  0x30   :  { %v51_v6 = vrot.slane %v50_v5, 1 }
  0x32   :  { %v52_v7 = vmax.f32 %v50_v5, %v51_v6 }
  0x34   :  { %v53_v9 = vsub.f32 %v36_v0, %v52_v7 }
  0x36   :  { %v54_v10 = vmul.f32 1.442695, %v53_v9  ;;  %v63_v13 = vsel %vm44_vm1, %v53_v9, 0.0 }
  0x37   :  { %v64_v15 = vsel %vm45_vm0, %v63_v13, 0.0 }
  0x38   :  { %121 = vpow2.f32 %v54_v10  ;;  %v65_v18 = vrot.slane %v64_v15, 4 }
  0x3a   :  { %v66_v21 = vadd.f32 %v65_v18, %v64_v15 }
  0x3c   :  { %v67_v24 = vrot.slane %v66_v21, 2 }
  0x3e   :  { %v68_v26 = vadd.f32 %v67_v24, %v66_v21 }
  0x40   :  { %v69_v27 = vrot.slane %v68_v26, 1 }
  0x42   :  { %v122_v14 = vpop.eup %121  ;;  %v70_v28 = vadd.f32 %v69_v27, %v68_v26 }
  0x43   :  { %v56_v16 = vsel %vm45_vm0, %v122_v14, 0.0 }
  0x44   :  { %v57_v17 = vrot.slane %v56_v16, 4  ;;  %vm83_vm3 = vcmp.lt.f32.partialorder %v70_v28, 0.0 }
  0x46   :  { %v58_v19 = vadd.f32 %v57_v17, %v56_v16 }
  0x48   :  { %v59_v20 = vrot.slane %v58_v19, 2 }
  0x4a   :  { %v60_v22 = vadd.f32 %v59_v20, %v58_v19 }
  0x4c   :  { %v61_v23 = vrot.slane %v60_v22, 1 }
  0x4e   :  { %v62_v25 = vadd.f32 %v61_v23, %v60_v22 }
  0x50   :  { %123 = vlog2.f32 %v62_v25 }
  0x51   :  { %125 = vrcp.f32 %v62_v25 }
  0x5a   :  { %v124_v29 = vpop.eup %123 }
  0x5b   :  { %v72_v30 = vmul.f32 0.6931472, %v124_v29  ;;  %v126_v33 = vpop.eup %125 }
  0x5c   :  { %vm82_vm2 = vcmp.gt.f32.partialorder %v126_v33, 0.5 }
  0x5d   :  { %v73_v31 = vsub.f32 %v70_v28, %v72_v30  ;;  %vm84_vm4 = vmand %vm82_vm2, %vm83_vm3 }
  0x5f   :  { %v74_v32 = vmul.f32 1.442695, %v73_v31 }
  0x61   :  { %127 = vpow2.f32 %v74_v32 }
  0x6b   :  { %v128_v34 = vpop.eup %127 }
  0x6c   :  { %v76_v35 = vsub.f32 1.0, %v128_v34 }
  0x6e   :  { %v77_v36 = vmul.f32 %v76_v35, %v76_v35 }
  0x70   :  { %v78_v37 = vmul.f32 -1.0, %v77_v36 }
  0x72   :  { %v79_v38 = vmul.f32 %v78_v37, %v73_v31 }
  0x74   :  { %v85_v39 = vsel %vm84_vm4, 1e-05, %v79_v38 }
  0x75   :  { %v87_v40 = vsel %vm86_vm5, %v85_v39, 0.0 }
  0x76   :  { %88 = vadd.xlane.f32.xlu0 %v87_v40 }
 0x103   :  { %v89_v41 = vpop.xlane.xlu0 %88 }
 0x104   :  { %v90_v42 = vrot.slane %v89_v41, 4 }
 0x106   :  { %v91_v43 = vadd.f32 %v90_v42, %v89_v41 }
 0x108   :  { %v92_v44 = vrot.slane %v91_v43, 2 }
 0x10a   :  { %v93_v45 = vadd.f32 %v92_v44, %v91_v43 }
 0x10c   :  { %v94_v46 = vrot.slane %v93_v45, 1 }
 0x10e   :  { %v95_v47 = vadd.f32 %v94_v46, %v93_v45 }
 0x110   :  { %116 = vpush %v95_v47 }
 0x141   :  { %s117_s6 = spop %116 }
 0x142   :  { %v97_v48 = vstv %s117_s6 }
 0x143   :  { %98 = vst [vmem:[#allocation7] sm:$0xff] %v97_v48 }
 0x144   :  { %184 = shalt.err (!%p181_p6)
}
 0x145   :  { %s185_s10 = scalar_lea.hbm %s260_s2, 128 }
 0x146   :  { %p186_p7 = scmp.ne.s32.totalorder %s260_s2, %s185_s10  ;;  %p189_p8 = scmp.lt.u32.totalorder %s185_s10, %s260_s2 }
 0x148   :  { %p191_p9 = pnand %p189_p8, %p186_p7 }
 0x14a   :  { %194 = shalt.err (!%p191_p9)
}
 0x14b   :  { %108 = dma.vmem_to_hbm [thread:$0]  %s106_s5, 128, %s260_s2, [#allocation4]  }
 0x14c   :  { %199 = dma.done.wait [#allocation4], 128  }
 0x14d   :  { %200 = vsyncadd [#allocation4], 4294967168 }
 0x14e   :  { %112 = vsyncpa [#allocation3], 1 }
 0x14f   :  { %113 = vsyncpa [#allocation6], 1 }
 0x150   :  { %114 = vsyncpa [#allocation4], 1 }

</bundles_post_ra>
